<compile_context>
chip_gen: v6e
topology: v6e:2x2x1
jax: 0.10.0
libtpu: 0.0.40
codegen_flags: <defaults>
</compile_context>

<pallas_src>
from dataclasses import dataclass
from functools import partial
from typing import List

import jax
import jax.numpy as jnp
import numpy as np
from jax.experimental import pallas as pl
from jax.experimental.pallas import tpu as pltpu


@dataclass
class NKATConfig:
    """NKAT settings (mirrors the PyTorch dataclass, torch-free)."""
    theta_base: float = 1e-70
    planck_scale: float = 1.6e-35
    target_spectral_dim: float = 4.0
    grid_size: int = 32
    batch_size: int = 8
    num_test_functions: int = 32
    kan_layers: List[int] = None
    learning_rate: float = 0.0003
    num_epochs: int = 50

    def __post_init__(self):
        if self.kan_layers is None:
            self.kan_layers = [4, 64, 32, 16, 4]


_OUT_LANES = 8  # loss vector padded to 8 lanes


def _nkat_loss_kernel(m_ref, theta_ref, out_ref, *, target_dim, log_target):
    """m_ref: (2B, Cmax) VMEM = [coordinates rows 0:B ; dirac_field rows B:2B], zero-padded lanes.
       theta_ref: (1, 1) SMEM scalar.  out_ref: (1, 8) VMEM."""
    m = m_ref[...].astype(jnp.float32)
    twob = m.shape[0]
    B = twob // 2
    inv_b = 1.0 / B
    inv_bm1 = (1.0 / (B - 1)) if B > 1 else float("nan")   # torch.var (unbiased) -> NaN at B == 1
    inv_b2 = 1.0 / (B * B)

    d = m[B:, :]                                            # dirac field block (B, Cmax)

    # ---- one combined Gram for both pairwise-distance matrices (single MXU round trip) ------
    g = jax.lax.dot_general(m, m, (((1,), (1,)), ((), ())),
                            preferred_element_type=jnp.float32)            # (2B, 2B)
    r = jax.lax.broadcasted_iota(jnp.int32, (twob, twob), 0)
    c = jax.lax.broadcasted_iota(jnp.int32, (twob, twob), 1)
    gd = g * (r == c).astype(jnp.float32)                                   # diag(G) on the diagonal
    sq_row = jnp.sum(gd, axis=1, keepdims=True)                             # (2B, 1)  ||row_i||^2
    sq_col = jnp.sum(gd, axis=0, keepdims=True)                             # (1, 2B)  ||row_j||^2
    d2 = sq_row + sq_col - 2.0 * g                                          # squared distances
    ed = jnp.sqrt(jnp.maximum(d2[:B, :B], 0.0))                             # euclidean (coords)
    dd = jnp.sqrt(jnp.maximum(d2[B:, B:], 0.0))                             # dirac-field

    # ---- spectral dimension loss -------------------------------------------------------------
    fm = jnp.abs(d)                                                         # |dirac_field|
    mu = jnp.sum(fm, axis=0, keepdims=True) * inv_b                         # (1, Cmax)
    var = jnp.sum((fm - mu) ** 2, axis=0, keepdims=True) * inv_bm1          # unbiased (torch.var)
    total_var = jnp.sum(var, axis=1, keepdims=True)                         # (1, 1)
    max_var = jnp.max(var, axis=1, keepdims=True)                           # (1, 1)
    est_dim = total_var * pl.reciprocal(max_var + 1e-8, approx=True)
    spectral = (est_dim - jnp.float32(target_dim)) ** 2                     # mse vs scalar target

    # ---- Jacobi (anti-commutator) constraint: reuse Gram diagonal as sum(d^2, axis=1) --------
    anti = sq_row[B:, :]                                                    # (B, 1), ".real" no-op
    jacobi = jnp.sum(anti * anti, axis=0, keepdims=True) * inv_b            # (1, 1)

    # ---- Connes distance constraint -----------------------------------------------------------
    diff2 = (dd - ed) ** 2
    connes = jnp.sum(jnp.sum(diff2, axis=1, keepdims=True),
                     axis=0, keepdims=True) * inv_b2                        # (1, 1) mean

    # ---- theta regularization (theta via SMEM scalar; log(theta_base) folded at bind time) ---
    theta_vec = jnp.zeros((1, 1), jnp.float32) + theta_ref[0, 0]            # splat SMEM scalar
    theta_reg = (jnp.log(theta_vec) - jnp.float32(log_target)) ** 2         # (1, 1)

    total = 10.0 * spectral + 1.0 * jacobi + 1.0 * connes + 0.1 * theta_reg

    lane = jax.lax.broadcasted_iota(jnp.int32, (1, _OUT_LANES), 1)
    out = jnp.zeros((1, _OUT_LANES), jnp.float32)
    for i, v in enumerate((spectral, jacobi, connes, theta_reg, total)):
        out = out + jnp.where(lane == i, v, 0.0)
    out_ref[...] = out


@partial(jax.jit, static_argnames=("target_dim", "log_target"))
def _loss_impl(dirac_field, theta, coordinates, *, target_dim, log_target):
    d = jnp.asarray(dirac_field, jnp.float32)
    x = jnp.asarray(coordinates, jnp.float32)
    B, C = d.shape
    _, D = x.shape
    cmax = max(C, D)
    if C < cmax:
        d = jnp.pad(d, ((0, 0), (0, cmax - C)))     # zero-padded lanes don't change any term
    if D < cmax:
        x = jnp.pad(x, ((0, 0), (0, cmax - D)))
    m = jnp.concatenate([x, d], axis=0)             # (2B, cmax): coords rows then dirac rows
    theta_arr = jnp.asarray(theta, jnp.float32).reshape(1, 1)

    kernel = partial(_nkat_loss_kernel, target_dim=target_dim, log_target=log_target)
    out = pl.pallas_call(
        kernel,
        out_shape=jax.ShapeDtypeStruct((1, _OUT_LANES), jnp.float32),
        in_specs=[pl.BlockSpec(memory_space=pltpu.MemorySpace.VMEM),
                  pl.BlockSpec(memory_space=pltpu.MemorySpace.SMEM)],
        out_specs=pl.BlockSpec(memory_space=pltpu.MemorySpace.VMEM),
    )(m, theta_arr)

    # Slices happen inside the jitted program -> a single host dispatch overall.
    return {
        'spectral_dim': out[0, 0],
        'jacobi': out[0, 1],
        'connes': out[0, 2],
        'theta_reg': out[0, 3],
        'total': out[0, 4],
    }


def physics_constrained_loss(dirac_field, theta, coordinates, config: NKATConfig):
    """Pallas implementation of PhysicsConstrainedLoss.forward (jitted, one dispatch)."""
    # log(theta_base) evaluated in f32 like the PyTorch module: 1e-70 underflows to 0 -> -inf.
    with np.errstate(divide="ignore"):
        log_target = float(np.log(np.float32(config.theta_base)))
    return _loss_impl(dirac_field, theta, coordinates,
                      target_dim=float(config.target_spectral_dim),
                      log_target=log_target)


def _reference_loss(dirac, theta, coords, config: NKATConfig):
    """Pure-JAX mirror of the PyTorch forward (for a correctness check)."""
    fm = jnp.abs(dirac)
    var = jnp.var(fm, axis=0, ddof=1)
    spectral = (jnp.sum(var) / (jnp.max(var) + 1e-8) - config.target_spectral_dim) ** 2
    anti = jnp.sum(dirac ** 2, axis=1)
    jacobi = jnp.mean(anti ** 2)
    ed = jnp.linalg.norm(coords[:, None, :] - coords[None, :, :], axis=2)
    dd = jnp.linalg.norm(dirac[:, None, :] - dirac[None, :, :], axis=2)
    connes = jnp.mean((dd - ed) ** 2)
    theta_reg = (jnp.log(jnp.float32(theta)) - jnp.log(jnp.float32(config.theta_base))) ** 2
    total = 10.0 * spectral + 1.0 * jacobi + 1.0 * connes + 0.1 * theta_reg
    return {'spectral_dim': spectral, 'jacobi': jacobi, 'connes': connes,
            'theta_reg': theta_reg, 'total': total}


if __name__ == "__main__":
    # theta_base=1e-6 keeps log() finite in float32 (the dataclass default 1e-70 underflows to 0
    # in f32, producing -inf / inf exactly as the PyTorch module would).
    config = NKATConfig(theta_base=1e-6, batch_size=8)

    key = jax.random.PRNGKey(0)
    kd, kc = jax.random.split(key)
    B = config.batch_size
    C = config.kan_layers[-1]                       # 4 spinor components
    dirac_field = jax.random.normal(kd, (B, C), jnp.float32)
    coordinates = jax.random.normal(kc, (B, C), jnp.float32)
    theta = jnp.float32(3e-6)

    losses = physics_constrained_loss(dirac_field, theta, coordinates, config)
    jax.block_until_ready(losses['total'])

    ref = _reference_loss(dirac_field, theta, coordinates, config)
    # rtol loosened slightly vs exact-division version: est_dim now uses the EUP approximate
    # reciprocal (pl.reciprocal(approx=True)).
    for k in ('spectral_dim', 'jacobi', 'connes', 'theta_reg', 'total'):
        np.testing.assert_allclose(np.asarray(losses[k]), np.asarray(ref[k]),
                                   rtol=5e-3, atol=1e-4)

    print("KERNEL_OK")
</pallas_src>

<mosaic_0001>
module attributes {stable_mosaic.version = 11 : i64} {
  func.func @_nkat_loss_kernel(%arg0: memref<16x4xf32, #tpu.memory_space<vmem>>, %arg1: memref<1x1xf32, #tpu.memory_space<smem>>, %arg2: memref<1x8xf32, #tpu.memory_space<vmem>>) attributes {dimension_semantics = [], scalar_prefetch = 0 : i64, scratch_operands = 0 : i64, tpu.core_type = #tpu.core_type<tc>} {
    %c0 = arith.constant 0 : index
    %c0_0 = arith.constant 0 : index
    %0 = vector.load %arg0[%c0, %c0_0] : memref<16x4xf32, #tpu.memory_space<vmem>>, vector<16x4xf32>
    %1 = vector.extract_strided_slice %0 {offsets = [8, 0], sizes = [8, 4], strides = [1, 1]} : vector<16x4xf32> to vector<8x4xf32>
    %cst = arith.constant dense<0.000000e+00> : vector<16x16xf32>
    %2 = tpu.matmul %0, %0, %cst {dimension_numbers = #tpu.dot_dimension_numbers<[1], [1], [0], [0], [0, 0, 1, 0], [], []>} : vector<16x4xf32>, vector<16x4xf32>, vector<16x16xf32> -> vector<16x16xf32>
    %3 = tpu.iota {dimensions = array<i32: 0>} : vector<16x16xi32>
    %4 = tpu.iota {dimensions = array<i32: 1>} : vector<16x16xi32>
    %5 = arith.cmpi eq, %3, %4 : vector<16x16xi32>
    %6 = arith.extui %5 : vector<16x16xi1> to vector<16x16xi32>
    %7 = arith.sitofp %6 : vector<16x16xi32> to vector<16x16xf32>
    %8 = arith.mulf %2, %7 : vector<16x16xf32>
    %cst_1 = arith.constant dense<0.000000e+00> : vector<16xf32>
    %9 = vector.multi_reduction <add>, %8, %cst_1 [1] : vector<16x16xf32> to vector<16xf32>
    %10 = vector.shape_cast %9 : vector<16xf32> to vector<16x1xf32>
    %cst_2 = arith.constant dense<0.000000e+00> : vector<16xf32>
    %11 = vector.multi_reduction <add>, %8, %cst_2 [0] : vector<16x16xf32> to vector<16xf32>
    %12 = vector.shape_cast %11 : vector<16xf32> to vector<1x16xf32>
    %13 = vector.broadcast %10 : vector<16x1xf32> to vector<16x16xf32>
    %14 = vector.broadcast %12 : vector<1x16xf32> to vector<16x16xf32>
    %15 = arith.addf %13, %14 : vector<16x16xf32>
    %cst_3 = arith.constant 2.000000e+00 : f32
    %16 = vector.broadcast %cst_3 : f32 to vector<16x16xf32>
    %17 = arith.mulf %16, %2 : vector<16x16xf32>
    %18 = arith.subf %15, %17 : vector<16x16xf32>
    %19 = vector.extract_strided_slice %18 {offsets = [0, 0], sizes = [8, 8], strides = [1, 1]} : vector<16x16xf32> to vector<8x8xf32>
    %cst_4 = arith.constant 0.000000e+00 : f32
    %20 = vector.broadcast %cst_4 : f32 to vector<8x8xf32>
    %21 = arith.maximumf %19, %20 : vector<8x8xf32>
    %22 = math.sqrt %21 : vector<8x8xf32>
    %23 = vector.extract_strided_slice %18 {offsets = [8, 8], sizes = [8, 8], strides = [1, 1]} : vector<16x16xf32> to vector<8x8xf32>
    %cst_5 = arith.constant 0.000000e+00 : f32
    %24 = vector.broadcast %cst_5 : f32 to vector<8x8xf32>
    %25 = arith.maximumf %23, %24 : vector<8x8xf32>
    %26 = math.sqrt %25 : vector<8x8xf32>
    %27 = math.absf %1 : vector<8x4xf32>
    %cst_6 = arith.constant dense<0.000000e+00> : vector<4xf32>
    %28 = vector.multi_reduction <add>, %27, %cst_6 [0] : vector<8x4xf32> to vector<4xf32>
    %29 = vector.shape_cast %28 : vector<4xf32> to vector<1x4xf32>
    %cst_7 = arith.constant 1.250000e-01 : f32
    %30 = vector.broadcast %cst_7 : f32 to vector<1x4xf32>
    %31 = arith.mulf %29, %30 : vector<1x4xf32>
    %32 = vector.broadcast %31 : vector<1x4xf32> to vector<8x4xf32>
    %33 = arith.subf %27, %32 : vector<8x4xf32>
    %34 = arith.mulf %33, %33 : vector<8x4xf32>
    %cst_8 = arith.constant dense<0.000000e+00> : vector<4xf32>
    %35 = vector.multi_reduction <add>, %34, %cst_8 [0] : vector<8x4xf32> to vector<4xf32>
    %36 = vector.shape_cast %35 : vector<4xf32> to vector<1x4xf32>
    %cst_9 = arith.constant 0.142857149 : f32
    %37 = vector.broadcast %cst_9 : f32 to vector<1x4xf32>
    %38 = arith.mulf %36, %37 : vector<1x4xf32>
    %cst_10 = arith.constant dense<0.000000e+00> : vector<1xf32>
    %39 = vector.multi_reduction <add>, %38, %cst_10 [1] : vector<1x4xf32> to vector<1xf32>
    %40 = vector.shape_cast %39 : vector<1xf32> to vector<1x1xf32>
    %cst_11 = arith.constant dense<0xFF800000> : vector<1xf32>
    %41 = vector.multi_reduction <maximumf>, %38, %cst_11 [1] : vector<1x4xf32> to vector<1xf32>
    %42 = vector.shape_cast %41 : vector<1xf32> to vector<1x1xf32>
    %cst_12 = arith.constant 9.99999993E-9 : f32
    %43 = vector.broadcast %cst_12 : f32 to vector<1x1xf32>
    %44 = arith.addf %42, %43 : vector<1x1xf32>
    %45 = tpu.reciprocal %44 {approx = true} : vector<1x1xf32> -> vector<1x1xf32>
    %46 = arith.mulf %40, %45 : vector<1x1xf32>
    %cst_13 = arith.constant 4.000000e+00 : f32
    %47 = vector.broadcast %cst_13 : f32 to vector<1x1xf32>
    %48 = arith.subf %46, %47 : vector<1x1xf32>
    %49 = arith.mulf %48, %48 : vector<1x1xf32>
    %50 = vector.extract_strided_slice %10 {offsets = [8, 0], sizes = [8, 1], strides = [1, 1]} : vector<16x1xf32> to vector<8x1xf32>
    %51 = arith.mulf %50, %50 : vector<8x1xf32>
    %cst_14 = arith.constant dense<0.000000e+00> : vector<1xf32>
    %52 = vector.multi_reduction <add>, %51, %cst_14 [0] : vector<8x1xf32> to vector<1xf32>
    %53 = vector.shape_cast %52 : vector<1xf32> to vector<1x1xf32>
    %cst_15 = arith.constant 1.250000e-01 : f32
    %54 = vector.broadcast %cst_15 : f32 to vector<1x1xf32>
    %55 = arith.mulf %53, %54 : vector<1x1xf32>
    %56 = arith.subf %26, %22 : vector<8x8xf32>
    %57 = arith.mulf %56, %56 : vector<8x8xf32>
    %cst_16 = arith.constant dense<0.000000e+00> : vector<8xf32>
    %58 = vector.multi_reduction <add>, %57, %cst_16 [1] : vector<8x8xf32> to vector<8xf32>
    %59 = vector.shape_cast %58 : vector<8xf32> to vector<8x1xf32>
    %cst_17 = arith.constant dense<0.000000e+00> : vector<1xf32>
    %60 = vector.multi_reduction <add>, %59, %cst_17 [0] : vector<8x1xf32> to vector<1xf32>
    %61 = vector.shape_cast %60 : vector<1xf32> to vector<1x1xf32>
    %cst_18 = arith.constant 1.562500e-02 : f32
    %62 = vector.broadcast %cst_18 : f32 to vector<1x1xf32>
    %63 = arith.mulf %61, %62 : vector<1x1xf32>
    %cst_19 = arith.constant 0.000000e+00 : f32
    %64 = vector.broadcast %cst_19 : f32 to vector<1x1xf32>
    %c0_20 = arith.constant 0 : index
    %c0_21 = arith.constant 0 : index
    %65 = memref.load %arg1[%c0_20, %c0_21] : memref<1x1xf32, #tpu.memory_space<smem>>
    %66 = vector.broadcast %65 : f32 to vector<1x1xf32>
    %67 = arith.addf %64, %66 : vector<1x1xf32>
    %68 = math.log %67 : vector<1x1xf32>
    %cst_22 = arith.constant -13.8155107 : f32
    %69 = vector.broadcast %cst_22 : f32 to vector<1x1xf32>
    %70 = arith.subf %68, %69 : vector<1x1xf32>
    %71 = arith.mulf %70, %70 : vector<1x1xf32>
    %cst_23 = arith.constant 1.000000e+01 : f32
    %72 = vector.broadcast %cst_23 : f32 to vector<1x1xf32>
    %73 = arith.mulf %72, %49 : vector<1x1xf32>
    %cst_24 = arith.constant 1.000000e+00 : f32
    %74 = vector.broadcast %cst_24 : f32 to vector<1x1xf32>
    %75 = arith.mulf %74, %55 : vector<1x1xf32>
    %76 = arith.addf %73, %75 : vector<1x1xf32>
    %cst_25 = arith.constant 1.000000e+00 : f32
    %77 = vector.broadcast %cst_25 : f32 to vector<1x1xf32>
    %78 = arith.mulf %77, %63 : vector<1x1xf32>
    %79 = arith.addf %76, %78 : vector<1x1xf32>
    %cst_26 = arith.constant 1.000000e-01 : f32
    %80 = vector.broadcast %cst_26 : f32 to vector<1x1xf32>
    %81 = arith.mulf %80, %71 : vector<1x1xf32>
    %82 = arith.addf %79, %81 : vector<1x1xf32>
    %83 = tpu.iota {dimensions = array<i32: 1>} : vector<1x8xi32>
    %cst_27 = arith.constant 0.000000e+00 : f32
    %84 = vector.broadcast %cst_27 : f32 to vector<1x8xf32>
    %c0_i32 = arith.constant 0 : i32
    %85 = vector.broadcast %c0_i32 : i32 to vector<1x8xi32>
    %86 = arith.cmpi eq, %83, %85 : vector<1x8xi32>
    %cst_28 = arith.constant 0.000000e+00 : f32
    %87 = vector.shape_cast %49 : vector<1x1xf32> to vector<1x1xf32>
    %88 = vector.broadcast %87 : vector<1x1xf32> to vector<1x8xf32>
    %89 = vector.broadcast %cst_28 : f32 to vector<1x8xf32>
    %90 = arith.select %86, %88, %89 : vector<1x8xi1>, vector<1x8xf32>
    %91 = arith.addf %84, %90 : vector<1x8xf32>
    %c1_i32 = arith.constant 1 : i32
    %92 = vector.broadcast %c1_i32 : i32 to vector<1x8xi32>
    %93 = arith.cmpi eq, %83, %92 : vector<1x8xi32>
    %cst_29 = arith.constant 0.000000e+00 : f32
    %94 = vector.shape_cast %55 : vector<1x1xf32> to vector<1x1xf32>
    %95 = vector.broadcast %94 : vector<1x1xf32> to vector<1x8xf32>
    %96 = vector.broadcast %cst_29 : f32 to vector<1x8xf32>
    %97 = arith.select %93, %95, %96 : vector<1x8xi1>, vector<1x8xf32>
    %98 = arith.addf %91, %97 : vector<1x8xf32>
    %c2_i32 = arith.constant 2 : i32
    %99 = vector.broadcast %c2_i32 : i32 to vector<1x8xi32>
    %100 = arith.cmpi eq, %83, %99 : vector<1x8xi32>
    %cst_30 = arith.constant 0.000000e+00 : f32
    %101 = vector.shape_cast %63 : vector<1x1xf32> to vector<1x1xf32>
    %102 = vector.broadcast %101 : vector<1x1xf32> to vector<1x8xf32>
    %103 = vector.broadcast %cst_30 : f32 to vector<1x8xf32>
    %104 = arith.select %100, %102, %103 : vector<1x8xi1>, vector<1x8xf32>
    %105 = arith.addf %98, %104 : vector<1x8xf32>
    %c3_i32 = arith.constant 3 : i32
    %106 = vector.broadcast %c3_i32 : i32 to vector<1x8xi32>
    %107 = arith.cmpi eq, %83, %106 : vector<1x8xi32>
    %cst_31 = arith.constant 0.000000e+00 : f32
    %108 = vector.shape_cast %71 : vector<1x1xf32> to vector<1x1xf32>
    %109 = vector.broadcast %108 : vector<1x1xf32> to vector<1x8xf32>
    %110 = vector.broadcast %cst_31 : f32 to vector<1x8xf32>
    %111 = arith.select %107, %109, %110 : vector<1x8xi1>, vector<1x8xf32>
    %112 = arith.addf %105, %111 : vector<1x8xf32>
    %c4_i32 = arith.constant 4 : i32
    %113 = vector.broadcast %c4_i32 : i32 to vector<1x8xi32>
    %114 = arith.cmpi eq, %83, %113 : vector<1x8xi32>
    %cst_32 = arith.constant 0.000000e+00 : f32
    %115 = vector.shape_cast %82 : vector<1x1xf32> to vector<1x1xf32>
    %116 = vector.broadcast %115 : vector<1x1xf32> to vector<1x8xf32>
    %117 = vector.broadcast %cst_32 : f32 to vector<1x8xf32>
    %118 = arith.select %114, %116, %117 : vector<1x8xi1>, vector<1x8xf32>
    %119 = arith.addf %112, %118 : vector<1x8xf32>
    %c0_33 = arith.constant 0 : index
    %c0_34 = arith.constant 0 : index
    %120 = vector.load %arg2[%c0_33, %c0_34] : memref<1x8xf32, #tpu.memory_space<vmem>>, vector<1x8xf32>
    tpu.vector_store %arg2[%c0_33, %c0_34], %119 {strides = array<i32>} : memref<1x8xf32, #tpu.memory_space<vmem>>, vector<1x8xf32>,
    return
  }
}

</mosaic_0001>

<bundles_post_ra>
// kernel: _loss_impl.1
= control target key start
LH: loop header
LB: loop body
LE: loop exit
PB: predicated region body
PF: predicated region fallthrough
CT: control target
= control target key end

     0   :  { %vm14_vm0 = vcmask 31744   ;;  %v96_v14 = vlaneseq  ;;  %v267_v22 = vmov 0.0   ;;  %vm109_vm3 = vcmask 130048   ;;  %s269_s13 = smov 120   ;;  %s316_s0 = inlined_call_operand.vmem [shape: f32[16,4], index: 0, kind: input, shape index: {}]   ;;  %s317_s1 = inlined_call_operand.<no memory space> [shape: f32[1,1], index: 1, kind: input, shape index: {}]   ;;  %s318_s2 = inlined_call_operand.vmem [shape: f32[1,8], index: 2, kind: output, shape index: {}]  }
   0x1   :  { %v13_v0 = vld [vmem:[%s316_s0 + $0x8] sm:$0xff]  ;;  %v12_v1 = vld [vmem:[%s316_s0] sm:$0xff]  ;;  %s268_s0 = smov 8   ;;  %vm193_vm8 = vcmask 64512   ;;  %vm231_vm14 = vcmask 57344  }
   0x2   :  { %249 = vmatprep.subr.msk.mxu0 %vm14_vm0, %v13_v0  ;;  %253 = vmatprep.mubr.msk.f32.mxu0 %vm14_vm0, %v12_v1  ;;  %v145_v2 = vand.u32 2147483647, %v13_v0  ;;  %v97_v16 = vshrl.u32 %v96_v14, 7  ;;  %v299_v19 = vand.u32 127, %v96_v14 }
   0x3   :  { %250 = vmatpush3.xpose.msk.msra.mxu0 %vm14_vm0, %v13_v0 }
   0x4   :  { %251 = vmatprep.subr.msk.mxu0 %vm14_vm0, %v12_v1  ;;  %v146_v3 = vsel %vm14_vm0, %v145_v2, 0.0  ;;  %v98_v18 = vadd.s32 8, %v97_v16  ;;  %vm101_vm2 = vcmp.eq.s32.totalorder %v97_v16, %v299_v19  ;;  %vm216_vm9 = vcmp.eq.s32.totalorder %v299_v19, 0 }
   0x5   :  { %v147_v4 = vrot.slane %v146_v3, 4  ;;  %v241_v26 = vsel %vm101_vm2, 1.0, %v267_v22  ;;  %vm219_vm10 = vcmp.eq.s32.totalorder %v299_v19, 1  ;;  %vm222_vm11 = vcmp.eq.s32.totalorder %v299_v19, 2 }
   0x6   :  { %vm102_vm1 = vcmp.eq.s32.totalorder %v98_v18, %v299_v19  ;;  %vm225_vm12 = vcmp.eq.s32.totalorder %v299_v19, 3  ;;  %vm228_vm13 = vcmp.eq.s32.totalorder %v299_v19, 4 }
   0x7   :  { %252 = vmatpush3.xpose.msk.msra.mxu0 %vm14_vm0, %v12_v1  ;;  %v148_v5 = vadd.f32 %v147_v4, %v146_v3  ;;  %v242_v23 = vsel %vm102_vm1, 1.0, %v267_v22 }
   0x9   :  { %v149_v6 = vrot.slane %v148_v5, 2 }
   0xa   :  { %254 = vmatmul.mubr.msk.f32.vlgmr.msra.gmra.mxu0 %vm14_vm0, %v13_v0 }
   0xb   :  { %v150_v7 = vadd.f32 %v149_v6, %v148_v5 }
   0xd   :  { %v151_v8 = vrot.slane %v150_v7, 1 }
   0xf   :  { %v152_v9 = vadd.f32 %v151_v8, %v150_v7  ;;  %v205_v7 = vstv %s317_s1 }
  0x11   :  { %v153_v10 = vmul.f32 0.125, %v152_v9 }
  0x13   :  { %v154_v11 = vsub.f32 %v145_v2, %v153_v10 }
  0x15   :  { %v155_v12 = vmul.f32 %v154_v11, %v154_v11 }
  0x17   :  { %v156_v13 = vsel %vm14_vm0, %v155_v12, 0.0 }
  0x18   :  { %v157_v15 = vrot.slane %v156_v13, 4 }
  0x1a   :  { %v158_v17 = vadd.f32 %v157_v15, %v156_v13 }
  0x1c   :  { %v159_v20 = vrot.slane %v158_v17, 2 }
  0x1e   :  { %v160_v21 = vadd.f32 %v159_v20, %v158_v17 }
  0x20   :  { %v161_v24 = vrot.slane %v160_v21, 1 }
  0x22   :  { %v162_v30 = vadd.f32 %v161_v24, %v160_v21 }
  0x24   :  { %v163_v34 = vmul.f32 0.14285715, %v162_v30 }
  0x26   :  { %v167_v35 = vsel %vm14_vm0, %v163_v34, -inf  ;;  %v164_v36 = vsel %vm14_vm0, %v163_v34, 0.0 }
  0xca   :  { %v255_v25 = vpop.f32.mrf.mxu0 }
  0xcb   :  { %v108_v27 = vmul.f32 %v255_v25, %v242_v23  ;;  %v126_v48 = vmul.f32 2.0, %v255_v25 }
  0xcc   :  { %v87_v28 = vpop.f32.mrf.mxu0 }
  0xcd   :  { %v107_v29 = vmul.f32 %v241_v26, %v87_v28  ;;  %v113_v32 = vsel %vm109_vm3, %v108_v27, 0.0  ;;  %v125_v44 = vmul.f32 2.0, %v87_v28 }
  0xcf   :  { %v110_v31 = vsel %vm109_vm3, %v107_v29, 0.0 }
  0xd0   :  { %111 = vadd.xlane.f32.xlu0 %v110_v31  ;;  %v116_v33 = vadd.f32 %v113_v32, %v110_v31 }
  0xd2   :  { %v117_v37 = vrot.slane %v116_v33, 4 }
  0xd4   :  { %114 = vadd.xlane.f32.xlu0 %v113_v32  ;;  %v118_v38 = vadd.f32 %v117_v37, %v116_v33 }
  0xd6   :  { %v119_v39 = vrot.slane %v118_v38, 2 }
  0xd8   :  { %168 = vmax.xlane.f32.xlu0 %v167_v35  ;;  %v120_v40 = vadd.f32 %v119_v39, %v118_v38 }
  0xda   :  { %v121_v41 = vrot.slane %v120_v40, 1 }
  0xdc   :  { %165 = vadd.xlane.f32.xlu0 %v164_v36  ;;  %v122_v42 = vadd.f32 %v121_v41, %v120_v40 }
 0x159   :  { %v112_v43 = vpop.xlane.xlu0 %111 }
 0x15a   :  { %v123_v45 = vadd.f32 %v122_v42, %v112_v43 }
 0x15c   :  { %v127_v46 = vsub.f32 %v123_v45, %v125_v44 }
 0x15d   :  { %v115_v47 = vpop.xlane.xlu0 %114 }
 0x15e   :  { %v129_v49 = vmax.f32 %v127_v46, 0.0  ;;  %v124_v50 = vadd.f32 %v122_v42, %v115_v47  ;;  %v175_v6 = vmul.f32 %v115_v47, %v115_v47 }
 0x160   :  { %259 = vrsqrt.f32 %v129_v49  ;;  %v128_v51 = vsub.f32 %v124_v50, %v126_v48  ;;  %vm132_vm4 = vcmp.eq.f32.partialorder %v129_v49, inf  ;;  %v135_v54 = vand.u32 2147483648, %v129_v49 }
 0x161   :  { %vm134_vm5 = vcmp.eq.f32.partialorder %v129_v49, 0.0  ;;  %v169_v4 = vpop.xlane.xlu0 %168  ;;  %v176_v8 = vrot.slane %v175_v6, 4 }
 0x162   :  { %v137_v57 = vmax.f32 %v128_v51, 0.0  ;;  %v170_v5 = vadd.f32 1e-08, %v169_v4 }
 0x163   :  { %v177_v9 = vadd.f32 %v176_v8, %v175_v6 }
 0x164   :  { %261 = vrsqrt.f32 %v137_v57  ;;  %vm140_vm6 = vcmp.eq.f32.partialorder %v137_v57, inf  ;;  %v143_v61 = vand.u32 2147483648, %v137_v57  ;;  %vm142_vm7 = vcmp.eq.f32.partialorder %v137_v57, 0.0 }
 0x165   :  { %263 = vrcp.f32 %v170_v5  ;;  %v178_v10 = vrot.slane %v177_v9, 2  ;;  %v166_v12 = vpop.xlane.xlu0 %165 }
 0x166   :  { %265 = vlog2.f32 %v205_v7 }
 0x167   :  { %v179_v13 = vadd.f32 %v178_v10, %v177_v9 }
 0x169   :  { %v180_v17 = vrot.slane %v179_v13, 1 }
 0x16b   :  { %v181_v23 = vadd.f32 %v180_v17, %v179_v13 }
 0x16d   :  { %v260_v52 = vpop.eup %259  ;;  %v182_v28 = vmul.f32 0.125, %v181_v23 }
 0x16e   :  { %v131_v53 = vmul.f32 %v260_v52, %v129_v49 }
 0x16f   :  { %v220_v34 = vsel %vm219_vm10, %v182_v28, 0.0 }
 0x170   :  { %v133_v55 = vsel %vm132_vm4, %v129_v49, %v131_v53 }
 0x171   :  { %v136_v56 = vsel %vm134_vm5, %v135_v54, %v133_v55  ;;  %v262_v58 = vpop.eup %261 }
 0x172   :  { %184 = vrot.lane.b32.xlu1 %v136_v56, %s268_s0  ;;  %v139_v59 = vmul.f32 %v262_v58, %v137_v57  ;;  %v264_v11 = vpop.eup %263 }
 0x173   :  { %v172_v14 = vmul.f32 %v264_v11, %v166_v12  ;;  %v266_v15 = vpop.eup %265 }
 0x174   :  { %v141_v60 = vsel %vm140_vm6, %v137_v57, %v139_v59  ;;  %v208_v20 = vmul.f32 0.6931472, %v266_v15 }
 0x175   :  { %v144_v62 = vsel %vm142_vm7, %v143_v61, %v141_v60  ;;  %v243_v18 = vadd.f32 -4.0, %v172_v14 }
 0x176   :  { %v244_v25 = vadd.f32 13.815511, %v208_v20 }
 0x177   :  { %v174_v24 = vmul.f32 %v243_v18, %v243_v18 }
 0x178   :  { %v210_v30 = vmul.f32 %v244_v25, %v244_v25 }
 0x179   :  { %v211_v29 = vmul.f32 10.0, %v174_v24  ;;  %v217_v32 = vsel %vm216_vm9, %v174_v24, 0.0 }
 0x17a   :  { %v214_v36 = vmul.f32 0.1, %v210_v30  ;;  %v221_v38 = vadd.f32 %v220_v34, %v217_v32  ;;  %v226_v39 = vsel %vm225_vm12, %v210_v30, 0.0 }
 0x17b   :  { %v212_v35 = vadd.f32 %v211_v29, %v182_v28 }
 0x1e4   :  { %v185_v63 = vpop.permute.xlu1 %184 }
 0x1e5   :  { %v187_v0 = vsub.f32 %v144_v62, %v185_v63 }
 0x1e7   :  { %v188_v1 = vmul.f32 %v187_v0, %v187_v0 }
 0x1e9   :  { %190 = vrot.lane.b32.xlu1 %v188_v1, %s269_s13 }
 0x25b   :  { %v191_v2 = vpop.permute.xlu1 %190 }
 0x25c   :  { %v194_v3 = vsel %vm193_vm8, %v191_v2, 0.0 }
 0x25d   :  { %195 = vadd.xlane.f32.xlu1 %v194_v3 }
 0x2e6   :  { %v196_v16 = vpop.xlane.xlu1 %195 }
 0x2e7   :  { %v197_v21 = vrot.slane %v196_v16, 4 }
 0x2e9   :  { %v198_v22 = vadd.f32 %v197_v21, %v196_v16 }
 0x2eb   :  { %v199_v26 = vrot.slane %v198_v22, 2 }
 0x2ed   :  { %v200_v27 = vadd.f32 %v199_v26, %v198_v22 }
 0x2ef   :  { %v201_v31 = vrot.slane %v200_v27, 1 }
 0x2f1   :  { %v202_v33 = vadd.f32 %v201_v31, %v200_v27 }
 0x2f3   :  { %v203_v37 = vmul.f32 0.015625, %v202_v33 }
 0x2f5   :  { %v213_v40 = vadd.f32 %v212_v35, %v203_v37  ;;  %v223_v41 = vsel %vm222_vm11, %v203_v37, 0.0 }
 0x2f6   :  { %v224_v42 = vadd.f32 %v223_v41, %v221_v38 }
 0x2f7   :  { %v215_v43 = vadd.f32 %v214_v36, %v213_v40 }
 0x2f8   :  { %v227_v44 = vadd.f32 %v226_v39, %v224_v42 }
 0x2f9   :  { %v229_v45 = vsel %vm228_vm13, %v215_v43, 0.0 }
 0x2fa   :  { %v230_v46 = vadd.f32 %v229_v45, %v227_v44 }
 0x2fc   :  { %232 = vst.msk [vmem:[%s318_s2] sm:$0x1] %vm231_vm14, %v230_v46 }

</bundles_post_ra>
